<compile_context>
chip_gen: v5e
topology: v5e:2x2
jax: 0.10.0
libtpu: 0.0.40
codegen_flags: <defaults>
</compile_context>

<pallas_src>
import functools

import jax
import jax.numpy as jnp
from jax import lax
from jax.experimental import pallas as pl
from jax.experimental.pallas import tpu as pltpu

EPS = 1e-5


# ---------------------------------------------------------------------------
# VMEM sizing helpers
# ---------------------------------------------------------------------------
def _physical_vmem_bytes():
    try:
        info = pltpu.get_tpu_info()
        cap = getattr(info, "vmem_capacity_bytes", None)
        if cap:
            return int(cap)
    except Exception:
        pass
    return 64 << 20  # conservative default: v7x per-TensorCore VMEM


def _vmem_plan():
    phys = _physical_vmem_bytes()
    # Scoped-VMEM limit requested from Mosaic (headroom for internal scratch),
    # and the budget we size our explicit tiles against.
    limit = min(int(phys * 3 // 4), 96 << 20)   # 96 MiB on v5e/v6e, 48 MiB on v7x
    budget = int(limit * 3 // 4)                # 72 MiB / 36 MiB
    return limit, budget


def _round_up(x, m):
    return ((x + m - 1) // m) * m


def _pick_row_tile(R, per_row_bytes, fixed_bytes, budget, cap):
    avail = budget - fixed_bytes
    tm = avail // per_row_bytes if avail > 0 else 0
    tm = min(tm, cap, _round_up(R, 8))
    tm = (tm // 8) * 8
    return max(int(tm), 8)


def _pack_params(rows, H):
    """Pack 1-D (H,) params as rows of a single (8, H) f32 operand."""
    p = jnp.stack([r.astype(jnp.float32).reshape(H) for r in rows], axis=0)
    return jnp.pad(p, ((0, 8 - p.shape[0]), (0, 0)))


# ---------------------------------------------------------------------------
# Shared LayerNorm math (f32, biased variance, eps inside sqrt == PyTorch)
# ---------------------------------------------------------------------------
def _ln_rows(y, gamma, beta):
    mean = jnp.mean(y, axis=-1, keepdims=True)
    centered = y - mean
    var = jnp.mean(centered * centered, axis=-1, keepdims=True)
    inv = lax.rsqrt(var + EPS)
    return centered * inv * gamma + beta


# ---------------------------------------------------------------------------
# LayerNorm-only kernel (arbitrary sublayer applied outside)
# ---------------------------------------------------------------------------
def _layernorm_kernel(x_ref, p_ref, o_ref):
    x = x_ref[...].astype(jnp.float32)
    p = p_ref[...].astype(jnp.float32)          # row 0 = gamma, row 1 = beta
    o_ref[...] = _ln_rows(x, p[0:1, :], p[1:2, :]).astype(o_ref.dtype)


def layernorm_pallas(x2d, gamma, beta):
    """LayerNorm(x2d) over last dim.  x2d: (R, H); gamma/beta: (H,)."""
    R, H = x2d.shape
    in_b = x2d.dtype.itemsize
    limit, budget = _vmem_plan()
    per_row = 2 * H * in_b + 2 * H * in_b       # double-buffered in + out tiles
    fixed = 2 * 8 * H * 4                       # packed params, double-buffered
    tm = _pick_row_tile(R, per_row, fixed, budget, cap=512)

    R_pad = _round_up(R, tm)
    if R_pad != R:
        x2d = jnp.pad(x2d, ((0, R_pad - R), (0, 0)))
    params = _pack_params([gamma, beta], H)

    out = pl.pallas_call(
        _layernorm_kernel,
        out_shape=jax.ShapeDtypeStruct((R_pad, H), x2d.dtype),
        grid_spec=pltpu.PrefetchScalarGridSpec(
            num_scalar_prefetch=0,
            grid=(R_pad // tm,),
            in_specs=[
                pl.BlockSpec((tm, H), lambda i: (i, 0)),
                pl.BlockSpec((8, H), lambda i: (0, 0)),
            ],
            out_specs=pl.BlockSpec((tm, H), lambda i: (i, 0)),
        ),
        compiler_params=pltpu.CompilerParams(
            dimension_semantics=("parallel",),
            vmem_limit_bytes=limit,
        ),
    )(x2d, params)
    return out[:R] if R_pad != R else out


# ---------------------------------------------------------------------------
# Fused Linear(+bias) -> LayerNorm kernels
# ---------------------------------------------------------------------------
def _maybe_bf16(x, w, mxu_bf16):
    if mxu_bf16:
        return x.astype(jnp.bfloat16), w.astype(jnp.bfloat16)
    return x, w


def _fused_epilogue(y_f32, p_f32, o_ref):
    y = y_f32 + p_f32[0:1, :]                                   # bias
    o_ref[...] = _ln_rows(y, p_f32[1:2, :], p_f32[2:3, :]).astype(o_ref.dtype)


def _fused_wres_kernel(x_ref, w_ref, p_ref, o_ref, *, mxu_bf16):
    # Single K step: full W resident in VMEM (constant index_map -> DMA'd once).
    x, w = _maybe_bf16(x_ref[...], w_ref[...], mxu_bf16)
    y = jnp.dot(x, w, preferred_element_type=jnp.float32)
    _fused_epilogue(y, p_ref[...].astype(jnp.float32), o_ref)


def _fused_kchunk_inplace_kernel(x_ref, w_ref, p_ref, o_ref, *, mxu_bf16):
    # f32 output: accumulate directly into the output block (resident across K).
    k = pl.program_id(1)

    @pl.when(k == 0)
    def _():
        o_ref[...] = jnp.zeros_like(o_ref)

    x, w = _maybe_bf16(x_ref[...], w_ref[...], mxu_bf16)
    o_ref[...] += jnp.dot(x, w, preferred_element_type=jnp.float32)

    @pl.when(k == pl.num_programs(1) - 1)
    def _():
        _fused_epilogue(o_ref[...], p_ref[...].astype(jnp.float32), o_ref)


def _fused_kchunk_acc_kernel(x_ref, w_ref, p_ref, o_ref, acc_ref, *, mxu_bf16):
    # Non-f32 output: f32 scratch accumulator + cast in the epilogue.
    k = pl.program_id(1)

    @pl.when(k == 0)
    def _():
        acc_ref[...] = jnp.zeros_like(acc_ref)

    x, w = _maybe_bf16(x_ref[...], w_ref[...], mxu_bf16)
    acc_ref[...] += jnp.dot(x, w, preferred_element_type=jnp.float32)

    @pl.when(k == pl.num_programs(1) - 1)
    def _():
        _fused_epilogue(acc_ref[...], p_ref[...].astype(jnp.float32), o_ref)


def fused_linear_layernorm_pallas(x2d, W, b, gamma, beta, *,
                                  out_dtype=None, mxu_bf16=False, force_tk=None):
    """LayerNorm(x2d @ W + b) in one pallas_call.  x2d: (R, K), W: (K, H)."""
    R, K = x2d.shape
    K2, H = W.shape
    assert K == K2, "x / W inner dims mismatch"
    out_dtype = jnp.dtype(out_dtype or x2d.dtype)

    in_b = x2d.dtype.itemsize
    w_b = W.dtype.itemsize
    out_b = out_dtype.itemsize
    limit, budget = _vmem_plan()
    params_bytes = 2 * 8 * H * 4
    accumulate_in_out = (out_dtype == jnp.float32)

    def fixed_for(tk):                       # W double-buffer + packed params
        return 2 * tk * H * w_b + params_bytes

    def per_row_for(tk, with_acc):           # x dbuf + out dbuf (+ f32 acc)
        return 2 * tk * in_b + 2 * H * out_b + (H * 4 if with_acc else 0)

    # ---- choose the K chunk ----
    if force_tk is not None:
        tk = int(force_tk)
        assert K % tk == 0
    elif fixed_for(K) <= budget // 2:
        tk = K                               # W-resident: single K step
    else:
        ladder = [t for t in (2048, 1024, 512, 256, 128) if t <= K and K % t == 0]
        if not ladder:
            tk = K                           # no lane-aligned divisor: one K step
        else:
            tk = ladder[-1]                  # smallest aligned fallback
            for t in ladder:                 # largest tk whose W dbuf fits half budget
                if fixed_for(t) <= budget // 2:
                    tk = t
                    break

    single_step = (tk == K)
    with_acc = (not single_step) and (not accumulate_in_out)
    cap = 512 if single_step else 1024       # larger tm amortizes W re-streaming
    tm = _pick_row_tile(R, per_row_for(tk, with_acc), fixed_for(tk), budget, cap=cap)

    R_pad = _round_up(R, tm)
    if R_pad != R:
        x2d = jnp.pad(x2d, ((0, R_pad - R), (0, 0)))
    params = _pack_params([b, gamma, beta], H)

    if single_step:
        kernel = functools.partial(_fused_wres_kernel, mxu_bf16=mxu_bf16)
        grid = (R_pad // tm,)
        in_specs = [
            pl.BlockSpec((tm, K), lambda i: (i, 0)),
            pl.BlockSpec((K, H), lambda i: (0, 0)),     # constant -> DMA'd once
            pl.BlockSpec((8, H), lambda i: (0, 0)),
        ]
        out_specs = pl.BlockSpec((tm, H), lambda i: (i, 0))
        scratch = []
        dims = ("parallel",)
    else:
        if accumulate_in_out:
            kernel = functools.partial(_fused_kchunk_inplace_kernel, mxu_bf16=mxu_bf16)
            scratch = []
        else:
            kernel = functools.partial(_fused_kchunk_acc_kernel, mxu_bf16=mxu_bf16)
            scratch = [pltpu.VMEM((tm, H), jnp.float32)]
        grid = (R_pad // tm, K // tk)
        in_specs = [
            pl.BlockSpec((tm, tk), lambda i, kk: (i, kk)),
            pl.BlockSpec((tk, H), lambda i, kk: (kk, 0)),
            pl.BlockSpec((8, H), lambda i, kk: (0, 0)),
        ]
        out_specs = pl.BlockSpec((tm, H), lambda i, kk: (i, 0))
        dims = ("parallel", "arbitrary")

    out = pl.pallas_call(
        kernel,
        out_shape=jax.ShapeDtypeStruct((R_pad, H), out_dtype),
        grid_spec=pltpu.PrefetchScalarGridSpec(
            num_scalar_prefetch=0,
            grid=grid,
            in_specs=in_specs,
            out_specs=out_specs,
            scratch_shapes=scratch,
        ),
        compiler_params=pltpu.CompilerParams(
            dimension_semantics=dims,
            vmem_limit_bytes=limit,
        ),
    )(x2d, W, params)
    return out[:R] if R_pad != R else out


# ---------------------------------------------------------------------------
# SublayerConnection.forward equivalent
# ---------------------------------------------------------------------------
def sublayer_connection(x, gamma, beta, *, W=None, b=None, sublayer=None,
                        mxu_bf16=False, force_tk=None):
    """forward(x, sublayer) = Dropout(LayerNorm(sublayer(x)))  (dropout=identity, eval).

    If W (and optionally b) are given, the Linear sublayer is fused into one kernel.
    Otherwise `sublayer` runs as plain JAX before the LN-only kernel (this costs an
    extra HBM round-trip of the intermediate; prefer (W, b) for matmul sublayers).
    """
    B, S, _ = x.shape
    if W is not None:
        H = W.shape[1]
        if b is None:
            b = jnp.zeros((H,), dtype=jnp.float32)
        out2d = fused_linear_layernorm_pallas(
            x.reshape(B * S, -1), W, b, gamma, beta,
            mxu_bf16=mxu_bf16, force_tk=force_tk)
        return out2d.reshape(B, S, H)
    assert sublayer is not None, "provide either (W, b) or a sublayer callable"
    y = sublayer(x)
    H = y.shape[-1]
    out2d = layernorm_pallas(y.reshape(B * S, H), gamma, beta)
    return out2d.reshape(B, S, H)


# ---------------------------------------------------------------------------
# Demo / self-test
# ---------------------------------------------------------------------------
def _ln_ref(y, gamma, beta):
    mean = y.mean(-1, keepdims=True)
    var = ((y - mean) ** 2).mean(-1, keepdims=True)
    return (y - mean) / jnp.sqrt(var + EPS) * gamma + beta


if __name__ == "__main__":
    B, S, H = 2, 8, 32  # size = H (LayerNorm(size))
    key = jax.random.PRNGKey(0)
    kx, kw, kb, kx2, kw2, kb2 = jax.random.split(key, 6)

    x = jax.random.normal(kx, (B, S, H), dtype=jnp.float32)
    W = jax.random.normal(kw, (H, H), dtype=jnp.float32) * 0.02
    b = jax.random.normal(kb, (H,), dtype=jnp.float32) * 0.01
    gamma = jnp.ones((H,), dtype=jnp.float32)   # PyTorch LayerNorm default init
    beta = jnp.zeros((H,), dtype=jnp.float32)

    # 1) Fused W-resident path (single K step): Linear + bias + LayerNorm, one kernel.
    out_fused = sublayer_connection(x, gamma, beta, W=W, b=b)
    out_fused = jax.block_until_ready(out_fused)
    ref = _ln_ref(jnp.einsum("bsh,hk->bsk", x, W) + b, gamma, beta)
    assert jnp.allclose(out_fused, ref, atol=1e-4, rtol=1e-4)

    # 2) Generic-sublayer path (arbitrary callable + LN-only kernel).
    sub = lambda t: jnp.einsum("bsh,hk->bsk", t, W) + b
    out_ln = jax.block_until_ready(sublayer_connection(x, gamma, beta, sublayer=sub))
    assert jnp.allclose(out_ln, ref, atol=1e-4, rtol=1e-4)

    # 3) K-chunked path, f32 output accumulated in-place in the output block.
    K2, H2 = 256, 128
    x2 = jax.random.normal(kx2, (B, S, K2), dtype=jnp.float32)
    W2 = jax.random.normal(kw2, (K2, H2), dtype=jnp.float32) * 0.02
    b2 = jax.random.normal(kb2, (H2,), dtype=jnp.float32) * 0.01
    gamma2 = jnp.ones((H2,), dtype=jnp.float32)
    beta2 = jnp.zeros((H2,), dtype=jnp.float32)
    ref2 = _ln_ref(jnp.einsum("bsk,kh->bsh", x2, W2) + b2, gamma2, beta2)

    out_kchunk = sublayer_connection(x2, gamma2, beta2, W=W2, b=b2, force_tk=128)
    out_kchunk = jax.block_until_ready(out_kchunk)
    assert jnp.allclose(out_kchunk, ref2, atol=1e-4, rtol=1e-4)

    # 4) K-chunked path with bf16 I/O (f32 scratch accumulator kernel).
    out_bf16 = sublayer_connection(x2.astype(jnp.bfloat16), gamma2, beta2,
                                   W=W2.astype(jnp.bfloat16), b=b2, force_tk=128)
    out_bf16 = jax.block_until_ready(out_bf16)
    assert out_bf16.dtype == jnp.bfloat16
    assert jnp.allclose(out_bf16.astype(jnp.float32), ref2, atol=5e-2, rtol=5e-2)

    # 5) f32 I/O with bf16 MXU operands (v6e/v7x fast-MXU option, f32 accumulate).
    out_mxubf16 = sublayer_connection(x2, gamma2, beta2, W=W2, b=b2, mxu_bf16=True)
    out_mxubf16 = jax.block_until_ready(out_mxubf16)
    assert jnp.allclose(out_mxubf16, ref2, atol=5e-2, rtol=5e-2)

    print("KERNEL_OK")
</pallas_src>

<mosaic_0001>
module attributes {stable_mosaic.version = 11 : i64} {
  func.func @_fused_wres_kernel(%arg0: i32, %arg1: memref<16x32xf32, #tpu.memory_space<vmem>>, %arg2: memref<32x32xf32, #tpu.memory_space<vmem>>, %arg3: memref<8x32xf32, #tpu.memory_space<vmem>>, %arg4: memref<16x32xf32, #tpu.memory_space<vmem>>) attributes {dimension_semantics = [#tpu.dimension_semantics<parallel>], iteration_bounds = array<i64: 1>, scalar_prefetch = 0 : i64, scratch_operands = 0 : i64, tpu.core_type = #tpu.core_type<tc>, window_params = [{transform_indices = @transform_0, window_bounds = array<i64: 16, 32>}, {pipeline_mode = #tpu.pipeline_mode<synchronous>, transform_indices = @transform_1, window_bounds = array<i64: 32, 32>}, {pipeline_mode = #tpu.pipeline_mode<synchronous>, transform_indices = @transform_2, window_bounds = array<i64: 8, 32>}, {transform_indices = @transform_3, window_bounds = array<i64: 16, 32>}]} {
    %c0 = arith.constant 0 : index
    %c0_0 = arith.constant 0 : index
    %0 = vector.load %arg1[%c0, %c0_0] : memref<16x32xf32, #tpu.memory_space<vmem>>, vector<16x32xf32>
    %c0_1 = arith.constant 0 : index
    %c0_2 = arith.constant 0 : index
    %1 = vector.load %arg2[%c0_1, %c0_2] : memref<32x32xf32, #tpu.memory_space<vmem>>, vector<32x32xf32>
    %cst = arith.constant dense<0.000000e+00> : vector<16x32xf32>
    %2 = tpu.matmul %0, %1, %cst {dimension_numbers = #tpu.dot_dimension_numbers<[1], [0], [0], [1], [0, 0, 1, 1], [], []>} : vector<16x32xf32>, vector<32x32xf32>, vector<16x32xf32> -> vector<16x32xf32>
    %c0_3 = arith.constant 0 : index
    %c0_4 = arith.constant 0 : index
    %3 = vector.load %arg3[%c0_3, %c0_4] : memref<8x32xf32, #tpu.memory_space<vmem>>, vector<8x32xf32>
    %4 = vector.extract_strided_slice %3 {offsets = [0, 0], sizes = [1, 32], strides = [1, 1]} : vector<8x32xf32> to vector<1x32xf32>
    %5 = vector.broadcast %4 : vector<1x32xf32> to vector<16x32xf32>
    %6 = arith.addf %2, %5 : vector<16x32xf32>
    %7 = vector.extract_strided_slice %3 {offsets = [1, 0], sizes = [1, 32], strides = [1, 1]} : vector<8x32xf32> to vector<1x32xf32>
    %8 = vector.extract_strided_slice %3 {offsets = [2, 0], sizes = [1, 32], strides = [1, 1]} : vector<8x32xf32> to vector<1x32xf32>
    %cst_5 = arith.constant dense<0.000000e+00> : vector<16xf32>
    %9 = vector.multi_reduction <add>, %6, %cst_5 [1] : vector<16x32xf32> to vector<16xf32>
    %10 = vector.shape_cast %9 : vector<16xf32> to vector<16x1xf32>
    %cst_6 = arith.constant 3.200000e+01 : f32
    %11 = vector.broadcast %cst_6 : f32 to vector<16x1xf32>
    %12 = arith.divf %10, %11 : vector<16x1xf32>
    %13 = vector.broadcast %12 : vector<16x1xf32> to vector<16x32xf32>
    %14 = arith.subf %6, %13 : vector<16x32xf32>
    %15 = arith.mulf %14, %14 : vector<16x32xf32>
    %cst_7 = arith.constant dense<0.000000e+00> : vector<16xf32>
    %16 = vector.multi_reduction <add>, %15, %cst_7 [1] : vector<16x32xf32> to vector<16xf32>
    %17 = vector.shape_cast %16 : vector<16xf32> to vector<16x1xf32>
    %cst_8 = arith.constant 3.200000e+01 : f32
    %18 = vector.broadcast %cst_8 : f32 to vector<16x1xf32>
    %19 = arith.divf %17, %18 : vector<16x1xf32>
    %cst_9 = arith.constant 9.99999974E-6 : f32
    %20 = vector.broadcast %cst_9 : f32 to vector<16x1xf32>
    %21 = arith.addf %19, %20 : vector<16x1xf32>
    %22 = math.rsqrt %21 : vector<16x1xf32>
    %23 = vector.broadcast %22 : vector<16x1xf32> to vector<16x32xf32>
    %24 = arith.mulf %14, %23 : vector<16x32xf32>
    %25 = vector.broadcast %7 : vector<1x32xf32> to vector<16x32xf32>
    %26 = arith.mulf %24, %25 : vector<16x32xf32>
    %27 = vector.broadcast %8 : vector<1x32xf32> to vector<16x32xf32>
    %28 = arith.addf %26, %27 : vector<16x32xf32>
    %c0_10 = arith.constant 0 : index
    %c0_11 = arith.constant 0 : index
    %29 = vector.load %arg4[%c0_10, %c0_11] : memref<16x32xf32, #tpu.memory_space<vmem>>, vector<16x32xf32>
    tpu.vector_store %arg4[%c0_10, %c0_11], %28 {strides = array<i32>} : memref<16x32xf32, #tpu.memory_space<vmem>>, vector<16x32xf32>,
    return
  }
  func.func @transform_0(%arg0: i32) -> (i32, i32) {
    %c0_i32 = arith.constant 0 : i32
    %c0_i32_0 = arith.constant 0 : i32
    return %arg0, %c0_i32 : i32, i32
  }
  func.func @transform_1(%arg0: i32) -> (i32, i32) {
    %c0_i32 = arith.constant 0 : i32
    %c0_i32_0 = arith.constant 0 : i32
    %c0_i32_1 = arith.constant 0 : i32
    return %c0_i32, %c0_i32_0 : i32, i32
  }
  func.func @transform_2(%arg0: i32) -> (i32, i32) {
    %c0_i32 = arith.constant 0 : i32
    %c0_i32_0 = arith.constant 0 : i32
    %c0_i32_1 = arith.constant 0 : i32
    return %c0_i32, %c0_i32_0 : i32, i32
  }
  func.func @transform_3(%arg0: i32) -> (i32, i32) {
    %c0_i32 = arith.constant 0 : i32
    %c0_i32_0 = arith.constant 0 : i32
    return %arg0, %c0_i32 : i32, i32
  }
}

</mosaic_0001>

<bundles_post_ra>
// kernel: tpu_custom_call.1
= control target key start
LH: loop header
LB: loop body
LE: loop exit
PB: predicated region body
PF: predicated region fallthrough
CT: control target
= control target key end

     0   :  { %8 = vsyncpa [#allocation3], 0  ;;  %s359_s0 = inlined_call_operand.hbm [shape: f32[16,32], index: 0, kind: input, shape index: {}]   ;;  %s360_s1 = inlined_call_operand.hbm [shape: f32[32,32], index: 1, kind: input, shape index: {}]   ;;  %s361_s2 = inlined_call_operand.hbm [shape: f32[8,32], index: 2, kind: input, shape index: {}]   ;;  %s362_s3 = inlined_call_operand.hbm [shape: f32[16,32], index: 3, kind: output, shape index: {}]  }
   0x1   :  { %9 = vsyncpa [#allocation6], 0 }
   0x2   :  { %10 = vsyncpa [#allocation4], 0  ;;  %s28_s14 = sshll.u32 %s360_s1, 4  ;;  %s298_s15 = smov [#allocation5]   ;;  %s29_s14 = int_to_ptr.hbm [resolvable:$true] %s28_s14 }
   0x3   :  { %s30_s16 = sshll.u32 %s298_s15, 4  ;;  %s15_s19 = sshll.u32 %s359_s0, 4  ;;  %s31_s16 = int_to_ptr.vmem [resolvable:$true] %s30_s16  ;;  %s16_s19 = int_to_ptr.hbm [resolvable:$true] %s15_s19 }
   0x4   :  { %s299_s20 = smov 128   ;;  %s300_s21 = smov 8  }
   0x5   :  { %36 = dma.hbm_to_vmem [thread:$0]  %s29_s14, 512, %s31_s16, [#allocation6], %s299_s20, %s299_s20, %s300_s21  }
   0x6   :  { %s301_s22 = smov [#allocation2]   ;;  %s42_s1 = sshll.u32 %s361_s2, 4  ;;  %s43_s1 = int_to_ptr.hbm [resolvable:$true] %s42_s1 }
   0x7   :  { %s17_s23 = sshll.u32 %s301_s22, 4  ;;  %s302_s0 = smov [#allocation7]   ;;  %s18_s23 = int_to_ptr.vmem [resolvable:$true] %s17_s23 }
   0x8   :  { %23 = dma.hbm_to_vmem [thread:$0]  %s16_s19, 256, %s18_s23, [#allocation3], %s299_s20, %s299_s20, %s300_s21  }
   0x9   :  { %s44_s26 = sshll.u32 %s302_s0, 4  ;;  %s45_s26 = int_to_ptr.vmem [resolvable:$true] %s44_s26 }
   0xa   :  { %47 = dma.hbm_to_vmem [thread:$0]  %s43_s1, 128, %s45_s26, [#allocation6]  }
   0xb   :  { %292 = dma.done.wait [#allocation3], 256  }
   0xc   :  { %293 = vsyncadd [#allocation3], 4294967040 }
   0xd   :  { %294 = dma.done.wait [#allocation6], 640  }
   0xe   :  { %295 = vsyncadd [#allocation6], 4294966656  ;;  %v65_v0 = vld [vmem:[#allocation5 + $0x18] sm:$0xff]  ;;  %v64_v1 = vld [vmem:[#allocation5 + $0x10] sm:$0xff]  ;;  %vm68_vm0 = vcmask 261120   ;;  %v303_v14 = vmov 32.0  }
   0xf   :  { %87 = vmatpush.msra.mxu0 %v65_v0  ;;  %179 = vmatpush.msra.mxu1 %v65_v0  ;;  %v63_v2 = vld [vmem:[#allocation5 + $0x8] sm:$0xff]  ;;  %v62_v3 = vld [vmem:[#allocation5] sm:$0xff]  ;;  %v60_v4 = vld [vmem:[#allocation2] sm:$0xff]  ;;  %190 = vrcp.f32 %v303_v14  ;;  %s304_s2 = smov [#allocation8]   ;;  %s163_s30 = sshll.u32 %s362_s3, 4  ;;  %s164_s30 = int_to_ptr.hbm [resolvable:$true] %s163_s30 }
  0x10   :  { %v61_v5 = vld [vmem:[#allocation2 + $0x8] sm:$0xff]  ;;  %v342_v6 = vld [vmem:[#allocation7] sm:$0xff]  ;;  %s161_s27 = sshll.u32 %s304_s2, 4  ;;  %s162_s27 = int_to_ptr.vmem [resolvable:$true] %s161_s27 }
  0x11   :  { %88 = vmatpush.msra.mxu0 %v64_v1  ;;  %180 = vmatpush.msra.mxu1 %v64_v1  ;;  %v67_v7 = vperm.slane %v342_v6, 0  ;;  %v149_v45 = vperm.slane %v342_v6, 1  ;;  %v152_v48 = vperm.slane %v342_v6, 2 }
  0x13   :  { %89 = vmatpush.msra.mxu0 %v63_v2  ;;  %181 = vmatpush.msra.mxu1 %v63_v2 }
  0x15   :  { %90 = vmatpush.msra.mxu0 %v62_v3  ;;  %182 = vmatpush.msra.mxu1 %v62_v3  ;;  %v191_v15 = vpop.eup %190 }
  0x16   :  { %177 = vmatmul.msk.f32.vlgmr.msra.gmra.mxu0 %vm68_vm0, %v60_v4  ;;  %178 = vmatmul.msk.f32.vlgmr.msra.gmra.mxu1 %vm68_vm0, %v61_v5  ;;  %v105_v16 = vmul.f32 32.0, %v191_v15  ;;  %vm109_vm1 = vweird.f32 %v191_v15 }
  0x18   :  { %v106_v17 = vsub.f32 1.0, %v105_v16 }
  0x1a   :  { %v107_v18 = vmul.f32 %v191_v15, %v106_v17 }
  0x1c   :  { %v108_v19 = vadd.f32 %v191_v15, %v107_v18 }
  0x1e   :  { %v110_v20 = vsel %vm109_vm1, %v191_v15, %v108_v19 }
  0x93   :  { %v92_v8 = vpop.f32.mrf.mxu0  ;;  %v95_v10 = vpop.f32.mrf.mxu1 }
  0x94   :  { %v93_v9 = vadd.f32 %v92_v8, %v67_v7  ;;  %v96_v12 = vadd.f32 %v95_v10, %v67_v7 }
  0x96   :  { %v98_v11 = vsel %vm68_vm0, %v93_v9, 0.0  ;;  %v101_v13 = vsel %vm68_vm0, %v96_v12, 0.0 }
  0x97   :  { %99 = vadd.xlane.f32.xlu0 %v98_v11 }
  0x9f   :  { %102 = vadd.xlane.f32.xlu0 %v101_v13 }
 0x10a   :  { %v100_v21 = vpop.xlane.xlu0 %99 }
 0x10b   :  { %v111_v22 = vmul.f32 %v110_v20, %v100_v21 }
 0x10d   :  { %v113_v23 = vsub.f32 %v93_v9, %v111_v22 }
 0x10f   :  { %v115_v24 = vmul.f32 %v113_v23, %v113_v23 }
 0x111   :  { %v117_v25 = vsel %vm68_vm0, %v115_v24, 0.0 }
 0x112   :  { %118 = vadd.xlane.f32.xlu1 %v117_v25  ;;  %v103_v26 = vpop.xlane.xlu0 %102 }
 0x113   :  { %v112_v27 = vmul.f32 %v110_v20, %v103_v26 }
 0x115   :  { %v114_v28 = vsub.f32 %v96_v12, %v112_v27 }
 0x117   :  { %v116_v29 = vmul.f32 %v114_v28, %v114_v28 }
 0x119   :  { %v120_v30 = vsel %vm68_vm0, %v116_v29, 0.0 }
 0x11a   :  { %121 = vadd.xlane.f32.xlu1 %v120_v30 }
 0x185   :  { %v119_v31 = vpop.xlane.xlu1 %118 }
 0x186   :  { %v123_v32 = vmul.f32 %v119_v31, %v110_v20 }
 0x188   :  { %v125_v33 = vadd.f32 1e-05, %v123_v32 }
 0x18a   :  { %192 = vrsqrt.f32 %v125_v33  ;;  %vm133_vm3 = vweird.f32 %v125_v33 }
 0x18d   :  { %v122_v34 = vpop.xlane.xlu1 %121 }
 0x18e   :  { %v124_v35 = vmul.f32 %v122_v34, %v110_v20 }
 0x190   :  { %v193_v36 = vpop.eup %192  ;;  %v126_v37 = vadd.f32 1e-05, %v124_v35 }
 0x191   :  { %v128_v38 = vmul.f32 %v193_v36, %v125_v33  ;;  %vm134_vm2 = vweird.f32 %v193_v36 }
 0x192   :  { %194 = vrsqrt.f32 %v126_v37  ;;  %vm135_vm4 = vmor %vm133_vm3, %vm134_vm2  ;;  %vm143_vm6 = vweird.f32 %v126_v37 }
 0x193   :  { %v129_v39 = vmul.f32 %v193_v36, %v128_v38 }
 0x195   :  { %v130_v40 = vmul.f32 0.5, %v129_v39 }
 0x197   :  { %v131_v41 = vsub.f32 1.5, %v130_v40 }
 0x198   :  { %v195_v42 = vpop.eup %194 }
 0x199   :  { %v132_v43 = vmul.f32 %v193_v36, %v131_v41  ;;  %v138_v44 = vmul.f32 %v195_v42, %v126_v37  ;;  %vm144_vm5 = vweird.f32 %v195_v42 }
 0x19a   :  { %vm145_vm7 = vmor %vm143_vm6, %vm144_vm5 }
 0x19b   :  { %v136_v46 = vsel %vm135_vm4, %v193_v36, %v132_v43  ;;  %v139_v47 = vmul.f32 %v195_v42, %v138_v44 }
 0x19c   :  { %v147_v49 = vmul.f32 %v136_v46, %v113_v23 }
 0x19d   :  { %v140_v50 = vmul.f32 0.5, %v139_v47 }
 0x19e   :  { %v150_v51 = vmul.f32 %v149_v45, %v147_v49 }
 0x19f   :  { %v141_v52 = vsub.f32 1.5, %v140_v50 }
 0x1a0   :  { %v153_v53 = vadd.f32 %v152_v48, %v150_v51 }
 0x1a1   :  { %v142_v54 = vmul.f32 %v195_v42, %v141_v52 }
 0x1a2   :  { %155 = vst.msk [vmem:[#allocation8] sm:$0xff] %vm68_vm0, %v153_v53 }
 0x1a3   :  { %v146_v55 = vsel %vm145_vm7, %v195_v42, %v142_v54 }
 0x1a4   :  { %v148_v56 = vmul.f32 %v146_v55, %v114_v28 }
 0x1a6   :  { %v151_v57 = vmul.f32 %v149_v45, %v148_v56 }
 0x1a8   :  { %v154_v58 = vadd.f32 %v152_v48, %v151_v57 }
 0x1aa   :  { %156 = vst.msk [vmem:[#allocation8 + $0x8] sm:$0xff] %vm68_vm0, %v154_v58 }
 0x1ab   :  { %169 = dma.vmem_to_hbm [thread:$0]  %s162_s27, 256, %s164_s30, [#allocation4], %s299_s20, %s299_s20, %s300_s21  }
 0x1ac   :  { %296 = dma.done.wait [#allocation4], 256  }
 0x1ad   :  { %297 = vsyncadd [#allocation4], 4294967040 }
 0x1ae   :  { %174 = vsyncpa [#allocation3], 1 }
 0x1af   :  { %175 = vsyncpa [#allocation6], 1 }
 0x1b0   :  { %176 = vsyncpa [#allocation4], 1 }

</bundles_post_ra>
